<compile_context>
chip_gen: v6e
topology: v6e:2x2x1
jax: 0.10.0
libtpu: 0.0.40
codegen_flags: <defaults>
</compile_context>

<pallas_src>
import functools

import jax
import jax.numpy as jnp
from jax.experimental import pallas as pl
from jax.experimental.pallas import tpu as pltpu


def _label_smoothing_kernel(pred_ref, tgt_ref, out_ref, *,
                            smooth_val, delta, n_valid, tile_cols):
    i = pl.program_id(0)

    x = pred_ref[...].astype(jnp.float32)            # (C, TB) classes on sublanes
    tgt = tgt_ref[...]                               # (1, TB) int32

    # log-softmax pieces, reducing over the class (sublane) axis
    m = jnp.max(x, axis=0, keepdims=True)            # (1, TB)
    z = x - m
    lse = jnp.log(jnp.sum(jnp.exp(z), axis=0, keepdims=True))   # (1, TB)
    sum_z = jnp.sum(z, axis=0, keepdims=True)                   # (1, TB)

    # z at the target class via a masked sublane reduce (no scatter, no logp)
    cls = jax.lax.broadcasted_iota(jnp.int32, x.shape, 0)        # (C, TB)
    z_tgt = jnp.sum(jnp.where(cls == tgt, z, 0.0), axis=0, keepdims=True)

    # sum_c -true_dist[c] * logp[c]  ==  lse - smooth_val*sum_z - delta*z_tgt
    per_col = lse - smooth_val * sum_z - delta * z_tgt           # (1, TB)

    # mask batch-padding columns
    col = jax.lax.broadcasted_iota(jnp.int32, per_col.shape, 1) + i * tile_cols
    per_col = jnp.where(col < n_valid, per_col, 0.0)

    # one partial sum per grid step -> disjoint lane-dense (1, 128) output slab
    block_sum = jnp.sum(per_col)
    lane = jax.lax.broadcasted_iota(jnp.int32, (1, 128), 1)
    out_ref[...] = jnp.where(lane == 0, block_sum, 0.0)


def label_smoothing_loss(pred, target, *, classes, smoothing=0.1, tile_cols=None):
    """pred: (N, C) float logits; target: (N,) int class indices."""
    N, C = pred.shape
    assert C == classes
    confidence = 1.0 - smoothing
    smooth_val = smoothing / (classes - 1)
    delta = confidence - smooth_val

    # Lane-dense layout for small C: classes on sublanes, batch on lanes.
    # TODO(synk): vocab-scale C (>= a few thousand classes) would prefer a
    # row-major (N, C) tiling over classes; not needed for this module (C=13).
    pred_t = jnp.transpose(pred).astype(jnp.float32)             # (C, N)
    tgt = target.astype(jnp.int32).reshape(1, N)

    n128 = -(-N // 128) * 128
    if tile_cols is None:
        c_pad = -(-C // 8) * 8
        # ~2 MiB of (sublane-padded) logits per block: large enough to hit the
        # HBM roofline, small enough that double buffering + intermediates fit
        # comfortably inside v7x's 64 MiB VMEM (and trivially v5e/v6e's 128 MiB).
        budget_cols = (2 * 1024 * 1024) // (c_pad * 4)
        tile_cols = min(n128, max(128, (budget_cols // 128) * 128))
    else:
        assert tile_cols % 128 == 0

    n_pad = -(-N // tile_cols) * tile_cols
    num_blocks = n_pad // tile_cols
    if n_pad != N:
        pred_t = jnp.pad(pred_t, ((0, 0), (0, n_pad - N)))
        tgt = jnp.pad(tgt, ((0, 0), (0, n_pad - N)))

    kernel = functools.partial(
        _label_smoothing_kernel,
        smooth_val=float(smooth_val),
        delta=float(delta),
        n_valid=N,
        tile_cols=tile_cols,
    )

    partials = pl.pallas_call(
        kernel,
        out_shape=jax.ShapeDtypeStruct((1, 128 * num_blocks), jnp.float32),
        grid_spec=pltpu.PrefetchScalarGridSpec(
            num_scalar_prefetch=0,
            grid=(num_blocks,),
            in_specs=[
                pl.BlockSpec((C, tile_cols), lambda i: (0, i)),
                pl.BlockSpec((1, tile_cols), lambda i: (0, i)),
            ],
            out_specs=pl.BlockSpec((1, 128), lambda i: (0, i)),
        ),
        compiler_params=pltpu.CompilerParams(
            dimension_semantics=("parallel",),
            vmem_limit_bytes=48 * 1024 * 1024,
        ),
    )(pred_t, tgt)

    return jnp.sum(partials) / jnp.float32(N)


def _reference(pred, target, classes, smoothing=0.1):
    confidence = 1.0 - smoothing
    logp = jax.nn.log_softmax(pred.astype(jnp.float32), axis=-1)
    true_dist = jnp.full_like(logp, smoothing / (classes - 1))
    true_dist = true_dist.at[jnp.arange(pred.shape[0]), target].set(confidence)
    return jnp.mean(jnp.sum(-true_dist * logp, axis=-1))


if __name__ == "__main__":
    key = jax.random.PRNGKey(0)
    N, C = 300, 13          # 13 chessboard-square classes (12 pieces + empty)
    k1, k2 = jax.random.split(key)
    pred = jax.random.normal(k1, (N, C), dtype=jnp.float32)
    target = jax.random.randint(k2, (N,), 0, C, dtype=jnp.int32)

    ref = _reference(pred, target, C, smoothing=0.1)

    # default tiling (single large column block, includes padding/masking)
    loss = jax.block_until_ready(
        label_smoothing_loss(pred, target, classes=C, smoothing=0.1))
    assert jnp.allclose(loss, ref, atol=1e-5, rtol=1e-4), (loss, ref)

    # multi-block path: exercises per-block parallel partials + batch padding
    loss_mb = jax.block_until_ready(
        label_smoothing_loss(pred, target, classes=C, smoothing=0.1, tile_cols=128))
    assert jnp.allclose(loss_mb, ref, atol=1e-5, rtol=1e-4), (loss_mb, ref)

    print("KERNEL_OK")
</pallas_src>

<mosaic_0001>
module attributes {stable_mosaic.version = 11 : i64} {
  func.func @_label_smoothing_kernel(%arg0: i32, %arg1: memref<13x384xf32, #tpu.memory_space<vmem>>, %arg2: memref<1x384xi32, #tpu.memory_space<vmem>>, %arg3: memref<1x128xf32, #tpu.memory_space<vmem>>) attributes {dimension_semantics = [#tpu.dimension_semantics<parallel>], iteration_bounds = array<i64: 1>, scalar_prefetch = 0 : i64, scratch_operands = 0 : i64, tpu.core_type = #tpu.core_type<tc>, window_params = [{transform_indices = @transform_0, window_bounds = array<i64: 13, 384>}, {transform_indices = @transform_1, window_bounds = array<i64: 1, 384>}, {transform_indices = @transform_2, window_bounds = array<i64: 1, 128>}]} {
    %c0 = arith.constant 0 : index
    %c0_0 = arith.constant 0 : index
    %0 = vector.load %arg1[%c0, %c0_0] : memref<13x384xf32, #tpu.memory_space<vmem>>, vector<13x384xf32>
    %c0_1 = arith.constant 0 : index
    %c0_2 = arith.constant 0 : index
    %1 = vector.load %arg2[%c0_1, %c0_2] : memref<1x384xi32, #tpu.memory_space<vmem>>, vector<1x384xi32>
    %cst = arith.constant dense<0xFF800000> : vector<384xf32>
    %2 = vector.multi_reduction <maximumf>, %0, %cst [0] : vector<13x384xf32> to vector<384xf32>
    %3 = vector.shape_cast %2 : vector<384xf32> to vector<1x384xf32>
    %4 = vector.broadcast %3 : vector<1x384xf32> to vector<13x384xf32>
    %5 = arith.subf %0, %4 : vector<13x384xf32>
    %6 = math.exp %5 : vector<13x384xf32>
    %cst_3 = arith.constant dense<0.000000e+00> : vector<384xf32>
    %7 = vector.multi_reduction <add>, %6, %cst_3 [0] : vector<13x384xf32> to vector<384xf32>
    %8 = vector.shape_cast %7 : vector<384xf32> to vector<1x384xf32>
    %9 = math.log %8 : vector<1x384xf32>
    %cst_4 = arith.constant dense<0.000000e+00> : vector<384xf32>
    %10 = vector.multi_reduction <add>, %5, %cst_4 [0] : vector<13x384xf32> to vector<384xf32>
    %11 = vector.shape_cast %10 : vector<384xf32> to vector<1x384xf32>
    %12 = tpu.iota {dimensions = array<i32: 0>} : vector<13x384xi32>
    %13 = vector.broadcast %1 : vector<1x384xi32> to vector<13x384xi32>
    %14 = arith.cmpi eq, %12, %13 : vector<13x384xi32>
    %cst_5 = arith.constant 0.000000e+00 : f32
    %15 = vector.broadcast %cst_5 : f32 to vector<13x384xf32>
    %16 = arith.select %14, %5, %15 : vector<13x384xi1>, vector<13x384xf32>
    %cst_6 = arith.constant dense<0.000000e+00> : vector<384xf32>
    %17 = vector.multi_reduction <add>, %16, %cst_6 [0] : vector<13x384xf32> to vector<384xf32>
    %18 = vector.shape_cast %17 : vector<384xf32> to vector<1x384xf32>
    %cst_7 = arith.constant 0.00833333377 : f32
    %19 = vector.broadcast %cst_7 : f32 to vector<1x384xf32>
    %20 = arith.mulf %19, %11 : vector<1x384xf32>
    %21 = arith.subf %9, %20 : vector<1x384xf32>
    %cst_8 = arith.constant 0.891666651 : f32
    %22 = vector.broadcast %cst_8 : f32 to vector<1x384xf32>
    %23 = arith.mulf %22, %18 : vector<1x384xf32>
    %24 = arith.subf %21, %23 : vector<1x384xf32>
    %25 = tpu.iota {dimensions = array<i32: 1>} : vector<1x384xi32>
    %c384_i32 = arith.constant 384 : i32
    %26 = arith.muli %arg0, %c384_i32 : i32
    %27 = vector.broadcast %26 : i32 to vector<1x384xi32>
    %28 = arith.addi %25, %27 : vector<1x384xi32>
    %c300_i32 = arith.constant 300 : i32
    %29 = vector.broadcast %c300_i32 : i32 to vector<1x384xi32>
    %30 = arith.cmpi slt, %28, %29 : vector<1x384xi32>
    %cst_9 = arith.constant 0.000000e+00 : f32
    %31 = vector.broadcast %cst_9 : f32 to vector<1x384xf32>
    %32 = arith.select %30, %24, %31 : vector<1x384xi1>, vector<1x384xf32>
    %33 = vector.shape_cast %32 : vector<1x384xf32> to vector<1x1x384xf32>
    %cst_10 = arith.constant dense<0.000000e+00> : vector<1xf32>
    %34 = vector.multi_reduction <add>, %33, %cst_10 [1, 2] : vector<1x1x384xf32> to vector<1xf32>
    %35 = vector.shape_cast %34 : vector<1xf32> to vector<1x1x1xf32>
    %36 = vector.extract %35[0, 0, 0] : f32 from vector<1x1x1xf32>
    %37 = tpu.iota {dimensions = array<i32: 1>} : vector<1x128xi32>
    %c0_i32 = arith.constant 0 : i32
    %38 = vector.broadcast %c0_i32 : i32 to vector<1x128xi32>
    %39 = arith.cmpi eq, %37, %38 : vector<1x128xi32>
    %cst_11 = arith.constant 0.000000e+00 : f32
    %40 = vector.broadcast %36 : f32 to vector<1x128xf32>
    %41 = vector.broadcast %cst_11 : f32 to vector<1x128xf32>
    %42 = arith.select %39, %40, %41 : vector<1x128xi1>, vector<1x128xf32>
    %c0_12 = arith.constant 0 : index
    %c0_13 = arith.constant 0 : index
    %43 = vector.load %arg3[%c0_12, %c0_13] : memref<1x128xf32, #tpu.memory_space<vmem>>, vector<1x128xf32>
    tpu.vector_store %arg3[%c0_12, %c0_13], %42 {strides = array<i32>} : memref<1x128xf32, #tpu.memory_space<vmem>>, vector<1x128xf32>,
    return
  }
  func.func @transform_0(%arg0: i32) -> (i32, i32) {
    %c0_i32 = arith.constant 0 : i32
    %c0_i32_0 = arith.constant 0 : i32
    return %c0_i32, %arg0 : i32, i32
  }
  func.func @transform_1(%arg0: i32) -> (i32, i32) {
    %c0_i32 = arith.constant 0 : i32
    %c0_i32_0 = arith.constant 0 : i32
    return %c0_i32, %arg0 : i32, i32
  }
  func.func @transform_2(%arg0: i32) -> (i32, i32) {
    %c0_i32 = arith.constant 0 : i32
    %c0_i32_0 = arith.constant 0 : i32
    return %c0_i32, %arg0 : i32, i32
  }
}

</mosaic_0001>

<bundles_post_ra>
// kernel: tpu_custom_call.1
= control target key start
LH: loop header
LB: loop body
LE: loop exit
PB: predicated region body
PF: predicated region fallthrough
CT: control target
= control target key end

     0   :  { %7 = vsyncpa [#allocation3], 0  ;;  %s389_s0 = inlined_call_operand.hbm [shape: f32[13,384], index: 0, kind: input, shape index: {}]   ;;  %s390_s1 = inlined_call_operand.hbm [shape: s32[1,384], index: 1, kind: input, shape index: {}]   ;;  %s391_s2 = inlined_call_operand.hbm [shape: f32[1,128], index: 2, kind: output, shape index: {}]  }
   0x1   :  { %8 = vsyncpa [#allocation6], 0 }
   0x2   :  { %9 = vsyncpa [#allocation4], 0  ;;  %s346_s9 = smov [#allocation2]  }
   0x3   :  { %s15_s10 = sshll.u32 %s346_s9, 4  ;;  %s16_s10 = int_to_ptr.vmem [resolvable:$true] %s15_s10 }
   0x4   :  { %s288_s11 = scalar_lea.vmem %s16_s10, 768  ;;  %p293_p1 = scmp.lt.s32.totalorder %s16_s10, %s16_s10 }
   0x5   :  { %p289_p0 = scmp.ne.s32.totalorder %s16_s10, %s288_s11  ;;  %p294_p2 = scmp.lt.s32.totalorder %s288_s11, %s288_s11 }
   0x7   :  { %p295_p3 = por %p294_p2, %p293_p1 }
   0x9   :  { %p296_p4 = pnand %p295_p3, %p289_p0 }
   0xb   :  { %299 = shalt.err (!%p296_p4)
}
   0xc   :  { %s347_s12 = smov 384   ;;  %s348_s13 = smov 24  }
   0xd   :  { %21 = dma.hbm_to_vmem [thread:$0]  %s389_s0, 768, %s16_s10, [#allocation3], %s347_s12, %s347_s12, %s348_s13  }
   0xe   :  { %s349_s16 = smov [#allocation5]  }
   0xf   :  { %s28_s17 = sshll.u32 %s349_s16, 4  ;;  %s29_s17 = int_to_ptr.vmem [resolvable:$true] %s28_s17 }
  0x10   :  { %s308_s18 = scalar_lea.vmem %s29_s17, 48  ;;  %s312_s19 = scalar_lea.vmem %s29_s17, 64 }
  0x11   :  { %p309_p5 = scmp.ne.s32.totalorder %s29_s17, %s308_s18  ;;  %p313_p6 = scmp.lt.s32.totalorder %s29_s17, %s29_s17 }
  0x12   :  { %p314_p7 = scmp.lt.s32.totalorder %s312_s19, %s308_s18 }
  0x14   :  { %p315_p8 = por %p314_p7, %p313_p6 }
  0x16   :  { %p316_p9 = pnand %p315_p8, %p309_p5 }
  0x18   :  { %319 = shalt.err (!%p316_p9)
}
  0x19   :  { %31 = dma.hbm_to_vmem [thread:$0]  %s390_s1, 48, %s29_s17, [#allocation6]  }
  0x1a   :  { %340 = dma.done.wait [#allocation3], 768  }
  0x1b   :  { %341 = vsyncadd [#allocation3], 4294966528 }
  0x1c   :  { %342 = dma.done.wait [#allocation6], 48  }
  0x1d   :  { %343 = vsyncadd [#allocation6], 4294967248  ;;  %vm45_vm0 = vcmask 1044480   ;;  %v38_v0 = vld [vmem:[#allocation2] sm:$0xff]  ;;  %v39_v1 = vld [vmem:[#allocation2 + $0x8] sm:$0xff]  ;;  %v142_v27 = vlaneseq  ;;  %vm220_vm7 = vcmask 1040384  }
  0x1e   :  { %v40_v2 = vld [vmem:[#allocation2 + $0x10] sm:$0xff]  ;;  %v41_v3 = vld [vmem:[#allocation2 + $0x18] sm:$0x1f]  ;;  %v42_v4 = vld [vmem:[#allocation2 + $0x20] sm:$0x1f]  ;;  %s350_s0 = smov [#allocation7]  }
  0x1f   :  { %v43_v5 = vld [vmem:[#allocation2 + $0x28] sm:$0x1f]  ;;  %v46_v6 = vsel %vm45_vm0, %v41_v3, -inf  ;;  %v54_v7 = vsel %vm45_vm0, %v42_v4, -inf  ;;  %v143_v37 = vshrl.u32 %v142_v27, 7  ;;  %s245_s1 = sshll.u32 %s350_s0, 4  ;;  %s246_s1 = int_to_ptr.vmem [resolvable:$true] %s245_s1 }
  0x20   :  { %v62_v8 = vsel %vm45_vm0, %v43_v5, -inf  ;;  %v47_v9 = vmax.f32 %v38_v0, %v46_v6  ;;  %v55_v10 = vmax.f32 %v39_v1, %v54_v7  ;;  %v44_v45 = vld [vmem:[#allocation5] sm:$0x7]  ;;  %s320_s23 = scalar_lea.vmem %s246_s1, 16  ;;  %s324_s24 = scalar_lea.vmem %s246_s1, 32 }
  0x21   :  { %v63_v11 = vmax.f32 %v40_v2, %v62_v8  ;;  %v147_v44 = vsub.s32 0, %v143_v37  ;;  %v151_v46 = vsub.s32 1, %v143_v37  ;;  %v155_v47 = vsub.s32 2, %v143_v37  ;;  %p321_p10 = scmp.ne.s32.totalorder %s246_s1, %s320_s23  ;;  %p325_p11 = scmp.lt.s32.totalorder %s246_s1, %s246_s1 }
  0x22   :  { %v48_v12 = vrot.slane %v47_v9, 4  ;;  %v56_v13 = vrot.slane %v55_v10, 4  ;;  %v144_v48 = vadd.s32 8, %v143_v37  ;;  %p326_p12 = scmp.lt.s32.totalorder %s324_s24, %s320_s23 }
  0x23   :  { %v64_v14 = vrot.slane %v63_v11, 4  ;;  %v148_v49 = vrot.slane %v44_v45, %v147_v44  ;;  %v152_v50 = vrot.slane %v44_v45, %v151_v46  ;;  %v156_v51 = vrot.slane %v44_v45, %v155_v47 }
  0x24   :  { %v49_v15 = vmax.f32 %v47_v9, %v48_v12  ;;  %v57_v16 = vmax.f32 %v55_v10, %v56_v13  ;;  %p327_p13 = por %p326_p12, %p325_p11 }
  0x25   :  { %v65_v17 = vmax.f32 %v63_v11, %v64_v14  ;;  %vm160_vm1 = vcmp.eq.s32.totalorder %v144_v48, %v148_v49  ;;  %vm161_vm2 = vcmp.eq.s32.totalorder %v144_v48, %v152_v50  ;;  %vm162_vm3 = vcmp.eq.s32.totalorder %v144_v48, %v156_v51 }
  0x26   :  { %v50_v18 = vrot.slane %v49_v15, 2  ;;  %v58_v19 = vrot.slane %v57_v16, 2  ;;  %vm157_vm4 = vcmp.eq.s32.totalorder %v143_v37, %v148_v49  ;;  %vm158_vm5 = vcmp.eq.s32.totalorder %v143_v37, %v152_v50  ;;  %p328_p0 = pnand %p327_p13, %p321_p10 }
  0x27   :  { %v66_v20 = vrot.slane %v65_v17, 2  ;;  %vm159_vm6 = vcmp.eq.s32.totalorder %v143_v37, %v156_v51 }
  0x28   :  { %v51_v21 = vmax.f32 %v49_v15, %v50_v18  ;;  %v59_v22 = vmax.f32 %v57_v16, %v58_v19 }
  0x29   :  { %v67_v23 = vmax.f32 %v65_v17, %v66_v20 }
  0x2a   :  { %v52_v24 = vrot.slane %v51_v21, 1  ;;  %v60_v25 = vrot.slane %v59_v22, 1 }
  0x2b   :  { %v68_v26 = vrot.slane %v67_v23, 1 }
  0x2c   :  { %v53_v28 = vmax.f32 %v51_v21, %v52_v24  ;;  %v61_v29 = vmax.f32 %v59_v22, %v60_v25 }
  0x2d   :  { %v69_v30 = vmax.f32 %v67_v23, %v68_v26 }
  0x2e   :  { %v70_v31 = vsub.f32 %v38_v0, %v53_v28  ;;  %v71_v32 = vsub.f32 %v39_v1, %v61_v29  ;;  %v73_v34 = vsub.f32 %v41_v3, %v53_v28  ;;  %v74_v35 = vsub.f32 %v42_v4, %v61_v29 }
  0x2f   :  { %v72_v33 = vsub.f32 %v40_v2, %v69_v30  ;;  %v75_v36 = vsub.f32 %v43_v5, %v69_v30 }
  0x30   :  { %v76_v38 = vmul.f32 1.442695, %v70_v31  ;;  %v78_v39 = vmul.f32 1.442695, %v71_v32  ;;  %v82_v41 = vmul.f32 1.442695, %v73_v34 }
  0x31   :  { %v80_v40 = vmul.f32 1.442695, %v72_v33  ;;  %v84_v42 = vmul.f32 1.442695, %v74_v35  ;;  %v86_v43 = vmul.f32 1.442695, %v75_v36 }
  0x32   :  { %262 = vpow2.f32 %v76_v38  ;;  %v166_v52 = vsel %vm160_vm1, %v73_v34, 0.0  ;;  %v118_v54 = vsel %vm45_vm0, %v73_v34, 0.0  ;;  %v167_v55 = vsel %vm161_vm2, %v74_v35, 0.0 }
  0x33   :  { %264 = vpow2.f32 %v78_v39  ;;  %v126_v57 = vsel %vm45_vm0, %v74_v35, 0.0  ;;  %v168_v58 = vsel %vm162_vm3, %v75_v36, 0.0  ;;  %v134_v60 = vsel %vm45_vm0, %v75_v36, 0.0 }
  0x34   :  { %266 = vpow2.f32 %v80_v40  ;;  %v163_v61 = vsel %vm157_vm4, %v70_v31, 0.0  ;;  %v169_v62 = vsel %vm45_vm0, %v166_v52, 0.0  ;;  %v119_v0 = vadd.f32 %v118_v54, %v70_v31 }
  0x35   :  { %268 = vpow2.f32 %v82_v41  ;;  %v164_v1 = vsel %vm158_vm5, %v71_v32, 0.0  ;;  %v177_v2 = vsel %vm45_vm0, %v167_v55, 0.0  ;;  %v127_v5 = vadd.f32 %v126_v57, %v71_v32 }
  0x36   :  { %270 = vpow2.f32 %v84_v42  ;;  %v165_v6 = vsel %vm159_vm6, %v72_v33, 0.0  ;;  %v185_v7 = vsel %vm45_vm0, %v168_v58, 0.0  ;;  %v135_v11 = vadd.f32 %v134_v60, %v72_v33 }
  0x37   :  { %272 = vpow2.f32 %v86_v43  ;;  %v170_v12 = vadd.f32 %v169_v62, %v163_v61  ;;  %v178_v15 = vadd.f32 %v177_v2, %v164_v1  ;;  %v120_v18 = vrot.slane %v119_v0, 4 }
  0x38   :  { %v186_v19 = vadd.f32 %v185_v7, %v165_v6  ;;  %v128_v21 = vrot.slane %v127_v5, 4  ;;  %v136_v24 = vrot.slane %v135_v11, 4 }
  0x39   :  { %v171_v25 = vrot.slane %v170_v12, 4  ;;  %v179_v28 = vrot.slane %v178_v15, 4  ;;  %v121_v31 = vadd.f32 %v120_v18, %v119_v0 }
  0x3a   :  { %v187_v32 = vrot.slane %v186_v19, 4  ;;  %v129_v34 = vadd.f32 %v128_v21, %v127_v5  ;;  %v137_v37 = vadd.f32 %v136_v24, %v135_v11 }
  0x3b   :  { %v172_v38 = vadd.f32 %v171_v25, %v170_v12  ;;  %v180_v40 = vadd.f32 %v179_v28, %v178_v15  ;;  %v122_v43 = vrot.slane %v121_v31, 2 }
  0x3c   :  { %v188_v44 = vadd.f32 %v187_v32, %v186_v19  ;;  %v130_v46 = vrot.slane %v129_v34, 2  ;;  %v138_v49 = vrot.slane %v137_v37, 2 }
  0x3d   :  { %v173_v50 = vrot.slane %v172_v38, 2  ;;  %v181_v52 = vrot.slane %v180_v40, 2  ;;  %v123_v54 = vadd.f32 %v122_v43, %v121_v31 }
  0x3e   :  { %v189_v55 = vrot.slane %v188_v44, 2  ;;  %v139_v57 = vadd.f32 %v138_v49, %v137_v37 }
  0x3f   :  { %v263_v53 = vpop.eup %262  ;;  %v174_v58 = vadd.f32 %v173_v50, %v172_v38  ;;  %v124_v60 = vrot.slane %v123_v54, 1 }
  0x40   :  { %v265_v56 = vpop.eup %264  ;;  %v190_v61 = vadd.f32 %v189_v55, %v188_v44 }
  0x41   :  { %v267_v59 = vpop.eup %266  ;;  %v175_v0 = vrot.slane %v174_v58, 1  ;;  %v125_v2 = vadd.f32 %v124_v60, %v123_v54 }
  0x42   :  { %v269_v63 = vpop.eup %268 }
  0x43   :  { %v271_v3 = vpop.eup %270  ;;  %v88_v4 = vsel %vm45_vm0, %v269_v63, 0.0  ;;  %v140_v63 = vrot.slane %v139_v57, 1  ;;  %v176_v6 = vadd.f32 %v175_v0, %v174_v58 }
  0x44   :  { %v273_v8 = vpop.eup %272  ;;  %v89_v9 = vadd.f32 %v263_v53, %v88_v4  ;;  %v96_v10 = vsel %vm45_vm0, %v271_v3, 0.0  ;;  %v191_v3 = vrot.slane %v190_v61, 1 }
  0x45   :  { %v97_v13 = vadd.f32 %v265_v56, %v96_v10  ;;  %v104_v14 = vsel %vm45_vm0, %v273_v8, 0.0  ;;  %v131_v56 = vadd.f32 %v130_v46, %v129_v34  ;;  %v141_v5 = vadd.f32 %v140_v63, %v139_v57 }
  0x46   :  { %v90_v16 = vrot.slane %v89_v9, 4  ;;  %v105_v17 = vadd.f32 %v267_v59, %v104_v14  ;;  %v182_v59 = vadd.f32 %v181_v52, %v180_v40  ;;  %v206_v8 = vand.u32 127, %v142_v27 }
  0x47   :  { %v98_v20 = vrot.slane %v97_v13, 4  ;;  %v132_v62 = vrot.slane %v131_v56, 1  ;;  %v193_v10 = vmul.f32 0.008333334, %v125_v2  ;;  %v195_v15 = vmul.f32 0.008333334, %v141_v5 }
  0x48   :  { %v91_v22 = vadd.f32 %v90_v16, %v89_v9  ;;  %v106_v23 = vrot.slane %v105_v17, 4  ;;  %v183_v1 = vrot.slane %v182_v59, 1  ;;  %v192_v9 = vadd.f32 %v191_v3, %v190_v61 }
  0x49   :  { %v99_v26 = vadd.f32 %v98_v20, %v97_v13  ;;  %v133_v4 = vadd.f32 %v132_v62, %v131_v56  ;;  %v199_v16 = vmul.f32 0.89166665, %v176_v6  ;;  %v208_v20 = vadd.s32 256, %v206_v8 }
  0x4a   :  { %v92_v29 = vrot.slane %v91_v22, 2  ;;  %v107_v30 = vadd.f32 %v106_v23, %v105_v17  ;;  %v184_v7 = vadd.f32 %v183_v1, %v182_v59  ;;  %v201_v23 = vmul.f32 0.89166665, %v192_v9 }
  0x4b   :  { %v100_v33 = vrot.slane %v99_v26, 2  ;;  %v194_v12 = vmul.f32 0.008333334, %v133_v4  ;;  %vm216_vm8 = vcmp.lt.s32.totalorder %v208_v20, 300  ;;  %vm235_vm9 = vcmp.eq.s32.totalorder %v206_v8, 0 }
  0x4c   :  { %v93_v35 = vadd.f32 %v92_v29, %v91_v22  ;;  %v108_v36 = vrot.slane %v107_v30, 2  ;;  %v200_v19 = vmul.f32 0.89166665, %v184_v7 }
  0x4d   :  { %v101_v39 = vadd.f32 %v100_v33, %v99_v26 }
  0x4e   :  { %v94_v41 = vrot.slane %v93_v35, 1  ;;  %v109_v42 = vadd.f32 %v108_v36, %v107_v30 }
  0x4f   :  { %v102_v45 = vrot.slane %v101_v39, 1 }
  0x50   :  { %v95_v47 = vadd.f32 %v94_v41, %v93_v35  ;;  %v110_v48 = vrot.slane %v109_v42, 1 }
  0x51   :  { %v103_v51 = vadd.f32 %v102_v45, %v101_v39 }
  0x52   :  { %v111_v53 = vadd.f32 %v110_v48, %v109_v42  ;;  %274 = vlog2.f32 %v95_v47 }
  0x53   :  { %276 = vlog2.f32 %v103_v51 }
  0x54   :  { %278 = vlog2.f32 %v111_v53 }
  0x5f   :  { %v275_v11 = vpop.eup %274 }
  0x60   :  { %v277_v13 = vpop.eup %276  ;;  %v113_v14 = vmul.f32 0.6931472, %v275_v11 }
  0x61   :  { %v279_v17 = vpop.eup %278  ;;  %v115_v18 = vmul.f32 0.6931472, %v277_v13 }
  0x62   :  { %v117_v21 = vmul.f32 0.6931472, %v279_v17  ;;  %v196_v22 = vsub.f32 %v113_v14, %v193_v10 }
  0x63   :  { %v197_v24 = vsub.f32 %v115_v18, %v194_v12 }
  0x64   :  { %v198_v25 = vsub.f32 %v117_v21, %v195_v15  ;;  %v202_v26 = vsub.f32 %v196_v22, %v199_v16 }
  0x65   :  { %v203_v27 = vsub.f32 %v197_v24, %v200_v19 }
  0x66   :  { %v204_v28 = vsub.f32 %v198_v25, %v201_v23  ;;  %v221_v29 = vsel %vm220_vm7, %v202_v26, 0.0 }
  0x67   :  { %v222_v30 = vsel %vm220_vm7, %v203_v27, 0.0 }
  0x68   :  { %v219_v31 = vsel %vm216_vm8, %v204_v28, 0.0  ;;  %v223_v32 = vadd.f32 %v222_v30, %v221_v29 }
  0x69   :  { %v224_v33 = vsel %vm220_vm7, %v219_v31, 0.0 }
  0x6a   :  { %v225_v34 = vadd.f32 %v224_v33, %v223_v32 }
  0x6c   :  { %226 = vadd.xlane.f32.xlu0 %v225_v34 }
  0xf5   :  { %v227_v35 = vpop.xlane.xlu0 %226 }
  0xf6   :  { %v228_v36 = vrot.slane %v227_v35, 4 }
  0xf8   :  { %v229_v37 = vadd.f32 %v228_v36, %v227_v35 }
  0xfa   :  { %v230_v38 = vrot.slane %v229_v37, 2 }
  0xfc   :  { %v231_v39 = vadd.f32 %v230_v38, %v229_v37 }
  0xfe   :  { %v232_v40 = vrot.slane %v231_v39, 1 }
 0x100   :  { %v233_v41 = vadd.f32 %v232_v40, %v231_v39 }
 0x102   :  { %255 = vpush %v233_v41 }
 0x133   :  { %s256_s22 = spop %255 }
 0x134   :  { %v236_v42 = vstv %s256_s22 }
 0x135   :  { %v237_v43 = vsel %vm235_vm9, %v236_v42, 0.0 }
 0x136   :  { %238 = vst [vmem:[#allocation7] sm:$0x1] %v237_v43 }
 0x137   :  { %331 = shalt.err (!%p328_p0)
}
 0x138   :  { %248 = dma.vmem_to_hbm [thread:$0]  %s246_s1, 16, %s391_s2, [#allocation4]  }
 0x139   :  { %344 = dma.done.wait [#allocation4], 16  }
 0x13a   :  { %345 = vsyncadd [#allocation4], 4294967280 }
 0x13b   :  { %252 = vsyncpa [#allocation3], 1 }
 0x13c   :  { %253 = vsyncpa [#allocation6], 1 }
 0x13d   :  { %254 = vsyncpa [#allocation4], 1 }

</bundles_post_ra>
